<compile_context>
chip_gen: v7x
topology: tpu7x:2x2x1
jax: 0.10.0
libtpu: 0.0.40
codegen_flags: <defaults>
</compile_context>

<pallas_src>
import jax
import jax.numpy as jnp
from jax.experimental import pallas as pl
from jax.experimental.pallas import tpu as pltpu

# Module __init__ parameters (dimension=1 over NCHW channels, output qparams).
OUT_SCALE = 0.2
OUT_ZP = 4


def _make_quant_cat_dequant_kernel(k_a, c_a, k_b, c_b):
    """Build the kernel with the folded requant coefficients baked in as
    constants:  k = s_in / OUT_SCALE,  c = -z_in * s_in / OUT_SCALE.

    Kernel refs:
      a_ref : VMEM (1, C, hw_tile) uint8
      b_ref : VMEM (1, C, hw_tile) uint8
      o_ref : VMEM (1, 2C, hw_tile) float32  (channel-concatenated output block)
    """
    lo = float(0 - OUT_ZP)      # clamp bounds shifted by -OUT_ZP (exact: int ZP)
    hi = float(255 - OUT_ZP)

    def kernel(a_ref, b_ref, o_ref):
        # uint8 -> f32 directly; all per-element math stays in f32.
        qa = a_ref[...].astype(jnp.float32)
        qb = b_ref[...].astype(jnp.float32)

        # fused: dequant(in qparams) -> requant(out qparams, round-half-even,
        # clamp to [0,255]) -> dequant(out qparams)
        oa = jnp.clip(jnp.round(qa * k_a + c_a), lo, hi) * OUT_SCALE
        ob = jnp.clip(jnp.round(qb * k_b + c_b), lo, hi) * OUT_SCALE

        # Concat along channels in registers, then ONE unmasked full-tile store.
        o_ref[...] = jnp.concatenate([oa, ob], axis=1)

    return kernel


def _pick_hw_tile(hw, n, c):
    """Choose the lane (flattened-HW) tile size.

    Per-step double-buffered footprint ~= 2 * (2*C*t bytes u8 in + 2*C*t*4 bytes
    f32 out) ~= 20*C*t bytes.  Budget ~12 MiB keeps headroom under v5e's 16 MiB
    scoped-VMEM default (and trivially under v6e/v7x defaults).

    Preference order:
      1) full-HW tile (contiguous writeback DMA per n, fewest grid steps),
      2) otherwise the largest multiple-of-128 tile within budget (cdiv grid
         masks the boundary block),
      3) v7x guard: if that would leave a single grid step, split HW in two so
         both TensorCores get work.
    """
    budget_bytes = 12 * 1024 * 1024
    max_t = max(128, budget_bytes // (20 * c))

    if hw <= max_t:
        tile = hw                                   # full-HW block
    else:
        tile = max(128, (max_t // 128) * 128)       # large lane-dense tile

    # Keep >= 2 parallel grid steps for v7x's 2 TensorCores when possible.
    if n * pl.cdiv(hw, tile) < 2 and hw > 128:
        half = pl.cdiv(hw, 2)
        tile = max(128, ((half + 127) // 128) * 128)

    return tile


def quantized_cat_model(a_q, b_q, a_scale, a_zp, b_scale, b_zp):
    """a_q, b_q: uint8 (N, C, H, W) holding quint8 values.
    a_scale/a_zp/b_scale/b_zp: static Python scalars (input qparams).
    Returns float32 (N, 2C, H, W) = DeQuantize(quantized.cat((a, b), dim=1))."""
    N, C, H, W = a_q.shape
    HW = H * W

    # Lane-dense layout: flatten spatial dims (layout-preserving reshape).
    a2 = a_q.reshape(N, C, HW)
    b2 = b_q.reshape(N, C, HW)

    # Folded requant coefficients baked as Python constants (static qparams).
    k_a = float(a_scale) / OUT_SCALE
    c_a = -float(a_zp) * float(a_scale) / OUT_SCALE
    k_b = float(b_scale) / OUT_SCALE
    c_b = -float(b_zp) * float(b_scale) / OUT_SCALE

    kernel = _make_quant_cat_dequant_kernel(k_a, c_a, k_b, c_b)

    hw_tile = _pick_hw_tile(HW, N, C)
    n_hw = pl.cdiv(HW, hw_tile)

    out_flat = pl.pallas_call(
        kernel,
        out_shape=jax.ShapeDtypeStruct((N, 2 * C, HW), jnp.float32),
        grid=(N, n_hw),
        in_specs=[
            pl.BlockSpec((1, C, hw_tile), lambda n, t: (n, 0, t)),   # a tile
            pl.BlockSpec((1, C, hw_tile), lambda n, t: (n, 0, t)),   # b tile
        ],
        # One output block covers BOTH channel halves for this (n, tile):
        out_specs=pl.BlockSpec((1, 2 * C, hw_tile), lambda n, t: (n, 0, t)),
        compiler_params=pltpu.CompilerParams(
            dimension_semantics=("parallel", "parallel"),
        ),
    )(a2, b2)

    return out_flat.reshape(N, 2 * C, H, W)


if __name__ == "__main__":
    key = jax.random.PRNGKey(0)
    k1, k2 = jax.random.split(key)

    N, C, H, W = 2, 4, 16, 16
    a_scale, a_zp = 0.3, 3
    b_scale, b_zp = 0.15, 5

    a_f = jax.random.uniform(k1, (N, C, H, W), jnp.float32, 0.0, 5.0)
    b_f = jax.random.uniform(k2, (N, C, H, W), jnp.float32, 0.0, 5.0)

    # Quantize the float inputs to quint8 (stored as uint8), mimicking
    # torch.quantize_per_tensor on the test inputs.
    a_q = jnp.clip(jnp.round(a_f / a_scale) + a_zp, 0, 255).astype(jnp.uint8)
    b_q = jnp.clip(jnp.round(b_f / b_scale) + b_zp, 0, 255).astype(jnp.uint8)

    out = jax.block_until_ready(
        quantized_cat_model(a_q, b_q, a_scale, a_zp, b_scale, b_zp)
    )
    assert out.shape == (N, 2 * C, H, W) and out.dtype == jnp.float32

    # Pure-JAX reference of the same (folded-but-equivalent) semantics:
    # dequant(in qparams) -> requant(OUT_SCALE, OUT_ZP, round-half-even, clamp
    # to [0,255]) -> dequant(OUT_SCALE, OUT_ZP), all in f32.
    def ref_one(q, s, z):
        k = jnp.float32(s / OUT_SCALE)
        c = jnp.float32(-z * s / OUT_SCALE)
        r = jnp.round(q.astype(jnp.float32) * k + c)
        return jnp.clip(r, float(0 - OUT_ZP), float(255 - OUT_ZP)) * OUT_SCALE

    ref = jnp.concatenate(
        [ref_one(a_q, a_scale, a_zp), ref_one(b_q, b_scale, b_zp)], axis=1
    )
    assert jnp.allclose(out, ref, atol=1e-6), "kernel does not match reference"

    print("KERNEL_OK")
</pallas_src>

<mosaic_0001>
module attributes {stable_mosaic.version = 11 : i64} {
  func.func @kernel(%arg0: i32, %arg1: i32, %arg2: memref<1x4x256xi8, #tpu.memory_space<vmem>>, %arg3: memref<1x4x256xi8, #tpu.memory_space<vmem>>, %arg4: memref<1x8x256xf32, #tpu.memory_space<vmem>>) attributes {dimension_semantics = [#tpu.dimension_semantics<parallel>, #tpu.dimension_semantics<parallel>], iteration_bounds = array<i64: 2, 1>, scalar_prefetch = 0 : i64, scratch_operands = 0 : i64, tpu.core_type = #tpu.core_type<tc>, window_params = [{transform_indices = @transform_0, window_bounds = array<i64: 1, 4, 256>}, {transform_indices = @transform_1, window_bounds = array<i64: 1, 4, 256>}, {transform_indices = @transform_2, window_bounds = array<i64: 1, 8, 256>}]} {
    %c0 = arith.constant 0 : index
    %c0_0 = arith.constant 0 : index
    %c0_1 = arith.constant 0 : index
    %0 = vector.load %arg2[%c0, %c0_0, %c0_1] : memref<1x4x256xi8, #tpu.memory_space<vmem>>, vector<1x4x256xi8>
    %1 = arith.uitofp %0 : vector<1x4x256xi8> to vector<1x4x256xf32>
    %c0_2 = arith.constant 0 : index
    %c0_3 = arith.constant 0 : index
    %c0_4 = arith.constant 0 : index
    %2 = vector.load %arg3[%c0_2, %c0_3, %c0_4] : memref<1x4x256xi8, #tpu.memory_space<vmem>>, vector<1x4x256xi8>
    %3 = arith.uitofp %2 : vector<1x4x256xi8> to vector<1x4x256xf32>
    %cst = arith.constant 1.500000e+00 : f32
    %4 = vector.broadcast %cst : f32 to vector<1x4x256xf32>
    %5 = arith.mulf %1, %4 : vector<1x4x256xf32>
    %cst_5 = arith.constant -4.500000e+00 : f32
    %6 = vector.broadcast %cst_5 : f32 to vector<1x4x256xf32>
    %7 = arith.addf %5, %6 : vector<1x4x256xf32>
    %8 = math.roundeven %7 : vector<1x4x256xf32>
    %cst_6 = arith.constant -4.000000e+00 : f32
    %cst_7 = arith.constant 2.510000e+02 : f32
    %9 = vector.broadcast %cst_6 : f32 to vector<1x4x256xf32>
    %10 = arith.maximumf %9, %8 : vector<1x4x256xf32>
    %11 = vector.broadcast %cst_7 : f32 to vector<1x4x256xf32>
    %12 = arith.minimumf %11, %10 : vector<1x4x256xf32>
    %cst_8 = arith.constant 2.000000e-01 : f32
    %13 = vector.broadcast %cst_8 : f32 to vector<1x4x256xf32>
    %14 = arith.mulf %12, %13 : vector<1x4x256xf32>
    %cst_9 = arith.constant 7.500000e-01 : f32
    %15 = vector.broadcast %cst_9 : f32 to vector<1x4x256xf32>
    %16 = arith.mulf %3, %15 : vector<1x4x256xf32>
    %cst_10 = arith.constant -3.750000e+00 : f32
    %17 = vector.broadcast %cst_10 : f32 to vector<1x4x256xf32>
    %18 = arith.addf %16, %17 : vector<1x4x256xf32>
    %19 = math.roundeven %18 : vector<1x4x256xf32>
    %cst_11 = arith.constant -4.000000e+00 : f32
    %cst_12 = arith.constant 2.510000e+02 : f32
    %20 = vector.broadcast %cst_11 : f32 to vector<1x4x256xf32>
    %21 = arith.maximumf %20, %19 : vector<1x4x256xf32>
    %22 = vector.broadcast %cst_12 : f32 to vector<1x4x256xf32>
    %23 = arith.minimumf %22, %21 : vector<1x4x256xf32>
    %cst_13 = arith.constant 2.000000e-01 : f32
    %24 = vector.broadcast %cst_13 : f32 to vector<1x4x256xf32>
    %25 = arith.mulf %23, %24 : vector<1x4x256xf32>
    %26 = tpu.concatenate %14, %25 in 1 : vector<1x4x256xf32>, vector<1x4x256xf32> -> vector<1x8x256xf32>
    %c0_14 = arith.constant 0 : index
    %c0_15 = arith.constant 0 : index
    %c0_16 = arith.constant 0 : index
    %27 = vector.load %arg4[%c0_14, %c0_15, %c0_16] : memref<1x8x256xf32, #tpu.memory_space<vmem>>, vector<1x8x256xf32>
    tpu.vector_store %arg4[%c0_14, %c0_15, %c0_16], %26 {strides = array<i32>} : memref<1x8x256xf32, #tpu.memory_space<vmem>>, vector<1x8x256xf32>,
    return
  }
  func.func @transform_0(%arg0: i32, %arg1: i32) -> (i32, i32, i32) {
    %c0_i32 = arith.constant 0 : i32
    %c0_i32_0 = arith.constant 0 : i32
    return %arg0, %c0_i32, %arg1 : i32, i32, i32
  }
  func.func @transform_1(%arg0: i32, %arg1: i32) -> (i32, i32, i32) {
    %c0_i32 = arith.constant 0 : i32
    %c0_i32_0 = arith.constant 0 : i32
    return %arg0, %c0_i32, %arg1 : i32, i32, i32
  }
  func.func @transform_2(%arg0: i32, %arg1: i32) -> (i32, i32, i32) {
    %c0_i32 = arith.constant 0 : i32
    %c0_i32_0 = arith.constant 0 : i32
    return %arg0, %c0_i32, %arg1 : i32, i32, i32
  }
}

</mosaic_0001>

<bundles_post_ra>
// kernel: tpu_custom_call.1
= control target key start
LH: loop header
LB: loop body
LE: loop exit
PB: predicated region body
PF: predicated region fallthrough
CT: control target
= control target key end

     0   :  { %7 = vsyncpa [#allocation3], 0  ;;  %s859_s0 = inlined_call_operand.hbm [shape: u8[2,4,256], index: 0, kind: input, shape index: {}]   ;;  %s860_s1 = inlined_call_operand.hbm [shape: u8[2,4,256], index: 1, kind: input, shape index: {}]   ;;  %s861_s2 = inlined_call_operand.hbm [shape: f32[2,8,256], index: 2, kind: output, shape index: {}]  }
   0x1   :  { %9 = vsyncpa [#allocation3 + $0x1], 0 }
   0x2   :  { %10 = vsyncpa [#allocation6], 0 }
   0x3   :  { %12 = vsyncpa [#allocation6 + $0x1], 0 }
   0x4   :  { %13 = vsyncpa [#allocation4], 0 }
   0x5   :  { %15 = vsyncpa [#allocation4 + $0x1], 0  ;;  %s638_s9 = smov 0   ;;  %s640_s10 = smov 0  }
   0x6   :  { %s642_s11 = smov 0   ;;  %s644_s12 = smov 0  }
   0x7   :  { %s646_s13 = smov 0   ;;  %s648_s14 = smov 0  }
   0x8 LB: > { %s381_s15 = sadd.s32 4294967295, %s618_s14   ;;  %s382_s16 = sadd.s32 4294967294, %s618_s14   ;;  %s618_s14 = sphi %s648_s14, %s21_s14   ;;  %s614_s13 = sphi %s646_s13, %s881_s13   ;;  %s610_s12 = sphi %s644_s12, %s880_s12   ;;  %s606_s11 = sphi %s642_s11, %s879_s11   ;;  %s602_s10 = sphi %s640_s10, %s878_s10   ;;  %s598_s9 = sphi %s638_s9, %s877_s9  }
   0x9   : > { %s33_s17 = sadd.s32 1, %s614_s13  ;;  %s42_s18 = sadd.s32 1, %s606_s11 }
   0xa   : > { %p35_p0 = scmp.ge.s32.totalorder %s33_s17, 2  ;;  %p49_p1 = scmp.ne.s32.totalorder %s606_s11, %s602_s10 }
   0xb   : > { %p50_p2 = scmp.eq.s32.totalorder %s618_s14, 0  ;;  %p55_p3 = scmp.ne.s32.totalorder %s602_s10, %s598_s9 }
   0xc   : > { %s883_s17 = smov (%p35_p0, %s33_s17), 0  ;;  %p56_p5 = scmp.eq.s32.totalorder %s381_s15, 0 }
   0xd   : > { %p679_p4 = por %p50_p2, %p49_p1  ;;  %s37_s20 = ssub.s32 %s614_s13, %s883_s17 }
   0xe   : > { %p109_p6 = scmp.eq.s32.totalorder %s381_s15, 1  ;;  %p40_p7 = scmp.eq.s32.totalorder %s37_s20, 0 }
   0xf   : > { %p685_p8 = por %p56_p5, %p55_p3  ;;  %p115_p10 = scmp.eq.s32.totalorder %s382_s16, 1 }
  0x10   : > { %p689_p9 = por %p109_p6, %p49_p1  ;;  %p422_p13 = scmp.lt.s32.totalorder %s618_s14, 2 }
  0x11   : > { %s865_s21 = scalar_select %p685_p8, 1, 0 }
  0x12   : > { %s866_s22 = scalar_select %p689_p9, 1, 0 }
  0x13   : > { %s694_s23 = scalar_select %p40_p7, %s606_s11, %s42_s18  }
  0x14   : > { %p696_p11 = por %p115_p10, %p55_p3  ;;  %s703_s25 = sand.u32 1, %s606_s11  }
  0x15   : > { %s385_s26 = sshll.u32 %s703_s25, 1  ;;  %s400_s27 = sshll.u32 %s614_s13, 5 }
  0x16   : > { %s867_s24 = scalar_select %p696_p11, 1, 0 }
  0x17   : > { %s712_s30 = scalar_lea.hbm %s859_s0, %s400_s27  ;;  %s139_s3 = scalar_lea.vmem [#allocation2], %s385_s26 }
  0x18   : > { %s149_s4 = sshll.u32 %s139_s3, 4  ;;  %p720_p0 = pnand %p422_p13, %p679_p4  ;;  %s716_s4 = int_to_ptr.vmem [resolvable:$true] %s149_s4 }
  0x19   : > { %s136_s6 = scalar_lea.sflag [#allocation3], %s703_s25  ;;  %s472_s7 = scalar_lea.hbm %s712_s30, 32 }
  0x1a   : > { %p473_p3 = scmp.ne.s32.totalorder %s712_s30, %s472_s7  ;;  %p474_p5 = pneg %p720_p0 }
  0x1b   : > { %s477_s16 = scalar_lea.hbm %s859_s0, 64  ;;  %p478_p4 = scmp.lt.u32.totalorder %s712_s30, %s859_s0 }
  0x1c   : > { %p475_p6 = pnand %p474_p5, %p473_p3  ;;  %p479_p10 = scmp.lt.u32.totalorder %s477_s16, %s472_s7 }
  0x1d   : > { %p481_p12 = scmp.lt.u32.totalorder %s472_s7, %s712_s30 }
  0x1e   : > { %p476_p7 = pneg %p475_p6  ;;  %p480_p13 = por %p479_p10, %p478_p4 }
  0x20   : > { %p482_p1 = por %p481_p12, %p480_p13 }
  0x22   : > { %p483_p2 = pnand %p482_p1, %p476_p7 }
  0x24   : > { %486 = shalt.err (!%p483_p2)
}
  0x25   : > { %s487_s20 = scalar_lea.vmem %s716_s4, 32  ;;  %s620_s28 = smov [#allocation2]  }
  0x26   : > { %p488_p3 = scmp.ne.s32.totalorder %s716_s4, %s487_s20  ;;  %s492_s29 = sshll.u32 %s620_s28, 4  ;;  %s493_s29 = int_to_ptr.vmem [resolvable:$false] %s492_s29 }
  0x27   : > { %s494_s3 = scalar_lea.vmem %s493_s29, 64  ;;  %p495_p9 = scmp.lt.s32.totalorder %s716_s4, %s493_s29 }
  0x28   : > { %p490_p6 = pnand %p488_p3, %p474_p5  ;;  %p496_p4 = scmp.lt.s32.totalorder %s494_s3, %s487_s20 }
  0x2a   : > { %p491_p11 = pneg %p490_p6  ;;  %p497_p10 = por %p496_p4, %p495_p9 }
  0x2c   : > { %p498_p12 = pnand %p497_p10, %p491_p11 }
  0x2e   : > { %501 = shalt.err (!%p498_p12)
}
  0x2f   : > { %414 = dma.hbm_to_vmem [thread:$0]  (!%p720_p0), %s712_s30, 32, %s716_s4, %s136_s6  }
  0x30   : > { %p869_p1 = scmp.lt.s32.totalorder %s618_s14, 3  ;;  %p870_p2 = scmp.ge.s32.totalorder %s618_s14, 1 }
  0x31   : > { %s765_s16 = scalar_lea.hbm %s860_s1, %s400_s27  ;;  %s160_s18 = scalar_lea.vmem [#allocation5], %s385_s26 }
  0x32   : > { %p756_p7 = pnand %p870_p2, %p869_p1  ;;  %s170_s19 = sshll.u32 %s160_s18, 4  ;;  %s171_s19 = int_to_ptr.vmem [resolvable:$true] %s170_s19 }
  0x33   : > { %s157_s30 = scalar_lea.sflag [#allocation6], %s703_s25  ;;  %s502_s4 = scalar_lea.hbm %s765_s16, 32 }
  0x34   : > { %s871_s7 = scalar_select %p756_p7, 1, 0 }
  0x35   : > { %p503_p9 = scmp.ne.s32.totalorder %s765_s16, %s502_s4  ;;  %s507_s27 = scalar_lea.hbm %s860_s1, 64 }
  0x36   : > { %p508_p3 = scmp.lt.u32.totalorder %s765_s16, %s860_s1  ;;  %p509_p6 = scmp.lt.u32.totalorder %s507_s27, %s502_s4 }
  0x37   : > { %p505_p11 = pnand %p503_p9, %p474_p5  ;;  %p511_p10 = scmp.lt.u32.totalorder %s502_s4, %s765_s16 }
  0x38   : > { %p510_p4 = por %p509_p6, %p508_p3 }
  0x39   : > { %p506_p13 = pneg %p505_p11 }
  0x3a   : > { %p512_p12 = por %p511_p10, %p510_p4 }
  0x3c   : > { %p513_p1 = pnand %p512_p12, %p506_p13 }
  0x3e   : > { %516 = shalt.err (!%p513_p1)
}
  0x3f   : > { %s517_s25 = scalar_lea.vmem %s171_s19, 32  ;;  %s621_s26 = smov [#allocation5]  }
  0x40   : > { %p518_p2 = scmp.ne.s32.totalorder %s171_s19, %s517_s25  ;;  %s522_s3 = sshll.u32 %s621_s26, 4  ;;  %s523_s3 = int_to_ptr.vmem [resolvable:$false] %s522_s3 }
  0x41   : > { %s524_s8 = scalar_lea.vmem %s523_s3, 64  ;;  %p525_p8 = scmp.lt.s32.totalorder %s171_s19, %s523_s3 }
  0x42   : > { %p520_p9 = pnand %p518_p2, %p474_p5  ;;  %p526_p7 = scmp.lt.s32.totalorder %s524_s8, %s517_s25 }
  0x44   : > { %p521_p11 = pneg %p520_p9  ;;  %p527_p3 = por %p526_p7, %p525_p8 }
  0x46   : > { %p528_p6 = pnand %p527_p3, %p521_p11 }
  0x48   : > { %531 = shalt.err (!%p528_p6)
}
  0x49   : > { %417 = dma.hbm_to_vmem [thread:$0]  (!%p720_p0), %s765_s16, 32, %s171_s19, %s157_s30  }
  0x4a   : > { %p872_p13 = scmp.ne.s32.totalorder %s871_s7, 0 }
  0x4b   : > { %s792_s15 = sand.u32 (!%p872_p13), 1, %s602_s10   ;;  %p873_p5 = scmp.ne.s32.totalorder (!%p872_p13), %s865_s21, 0 }
  0x4c   : > { %179 = sbr.rel (%p872_p13) target bundleno = 122 (0x7a), region = 28  ;;  %s392_s18 = sshll.u32 (!%p872_p13), %s792_s15, 1 }
  0x4d   : > { %s182_s4 = scalar_lea.sflag (!%p872_p13), [#allocation3], %s792_s15  ;;  %s185_s6 = scalar_lea.vmem (!%p872_p13), [#allocation2], %s392_s18 }
  0x53   : > { %585 = dma.done.wait (%p873_p5), %s182_s4, 32  }
  0x54   : > { %587 = vsyncadd (%p873_p5), %s182_s4, 4294967264  ;;  %s191_s5 = scalar_lea.sflag [#allocation6], %s792_s15  ;;  %s194_s16 = scalar_lea.vmem [#allocation5], %s392_s18 }
  0x55   : > { %589 = dma.done.wait (%p873_p5), %s191_s5, 32  }
  0x56   : > { %591 = vsyncadd (%p873_p5), %s191_s5, 4294967264  ;;  %v223_v0 = vld [vmem:[%s185_s6] sm:$0x3]  ;;  %v227_v1 = vld [vmem:[%s194_s16] sm:$0x3]  ;;  %s394_s7 = sshll.u32 %s792_s15, 4 }
  0x57   : > { %v224_v2 = vunpack.c.0.s8 %v223_v0  ;;  %v228_v3 = vunpack.c.0.s8 %v227_v1  ;;  %s219_s21 = scalar_lea.vmem [#allocation7], %s394_s7  ;;  %s402_s30 = sshll.u32 %s610_s12, 8  ;;  %vm249_vm0 = vcmask 1043456  }
  0x58   : > { %s271_s19 = sshll.u32 %s219_s21, 4  ;;  %s812_s28 = scalar_lea.hbm %s861_s2, %s402_s30  ;;  %s807_s19 = int_to_ptr.vmem [resolvable:$true] %s271_s19 }
  0x59   : > { %v225_v4 = vand.u32 255, %v224_v2  ;;  %v229_v5 = vand.u32 255, %v228_v3  ;;  %s255_s29 = scalar_lea.sflag [#allocation4], %s792_s15  ;;  %s532_s25 = scalar_lea.vmem %s807_s19, 256 }
  0x5a   : > { %p533_p8 = scmp.ne.s32.totalorder %s807_s19, %s532_s25  ;;  %p874_p0 = scmp.ne.s32.totalorder %s866_s22, 0 }
  0x5b   : > { %v226_v6 = vcvt.s32.f32 %v225_v4  ;;  %v230_v7 = vcvt.s32.f32 %v229_v5  ;;  %s622_s12 = smov [#allocation7]  }
  0x5c   : > { %p534_p7 = pnand %p533_p8, %p874_p0  ;;  %s536_s26 = sshll.u32 %s622_s12, 4  ;;  %s537_s26 = int_to_ptr.vmem [resolvable:$false] %s536_s26 }
  0x5d   : > { %v231_v8 = vmul.f32 1.5, %v226_v6  ;;  %v237_v9 = vmul.f32 0.75, %v230_v7  ;;  %s538_s3 = scalar_lea.vmem %s537_s26, 512  ;;  %p539_p10 = scmp.lt.s32.totalorder %s807_s19, %s537_s26 }
  0x5e   : > { %p535_p4 = pneg %p534_p7  ;;  %p540_p12 = scmp.lt.s32.totalorder %s538_s3, %s532_s25 }
  0x5f   : > { %v232_v10 = vadd.f32 -4.5, %v231_v8  ;;  %v238_v11 = vadd.f32 -3.75, %v237_v9 }
  0x60   : > { %p541_p1 = por %p540_p12, %p539_p10 }
  0x61   : > { %v403_v12 = vround.rtne.f32 %v232_v10  ;;  %v404_v13 = vround.rtne.f32 %v238_v11 }
  0x62   : > { %p542_p2 = pnand %p541_p1, %p535_p4 }
  0x63   : > { %v234_v14 = vmax.f32 %v403_v12, -4.0  ;;  %v240_v15 = vmax.f32 %v404_v13, -4.0 }
  0x65   : > { %v235_v16 = vmin.f32 %v234_v14, 251.0  ;;  %v241_v17 = vmin.f32 %v240_v15, 251.0 }
  0x67   : > { %v236_v18 = vmul.f32 0.2, %v235_v16  ;;  %v242_v19 = vmul.f32 0.2, %v241_v17 }
  0x69   : > { %v247_v20 = vcombine.low %v242_v19, %v242_v19  ;;  %v244_v21 = vcombine.high %v236_v18, %v236_v18 }
  0x6b   : > { %v250_v22 = vsel %vm249_vm0, %v236_v18, %v247_v20  ;;  %v251_v23 = vsel %vm249_vm0, %v244_v21, %v242_v19 }
  0x6c   : > { %252 = vst [vmem:[%s219_s21] sm:$0xff] %v250_v22  ;;  %253 = vst [vmem:[%s219_s21 + $0x8] sm:$0xff] %v251_v23 }
  0x6d   : > { %545 = shalt.err (!%p542_p2)
}
  0x6e   : > { %s546_s8 = scalar_lea.hbm %s812_s28, 256  ;;  %s550_s4 = scalar_lea.hbm %s861_s2, 512 }
  0x6f   : > { %p547_p9 = scmp.ne.s32.totalorder %s812_s28, %s546_s8  ;;  %p551_p6 = scmp.lt.u32.totalorder %s812_s28, %s861_s2 }
  0x70   : > { %p552_p13 = scmp.lt.u32.totalorder %s550_s4, %s546_s8  ;;  %p554_p8 = scmp.lt.u32.totalorder %s546_s8, %s812_s28 }
  0x71   : > { %p548_p11 = pnand %p547_p9, %p874_p0 }
  0x72   : > { %p553_p5 = por %p552_p13, %p551_p6 }
  0x73   : > { %p549_p3 = pneg %p548_p11 }
  0x74   : > { %p555_p7 = por %p554_p8, %p553_p5 }
  0x76   : > { %p556_p4 = pnand %p555_p7, %p549_p3 }
  0x78   : > { %559 = shalt.err (!%p556_p4)
}
  0x79   : > { %409 = dma.vmem_to_hbm [thread:$0]  (%p874_p0), %s807_s19, 256, %s812_s28, %s255_s29  }
  0x7a PF: > { %s283_s16 = sand.u32 1, %s598_s9   ;;  %p875_p10 = scmp.ne.s32.totalorder %s867_s24, 0 }
  0x7b   : > { %p876_p12 = scmp.ge.s32.totalorder %s618_s14, 2  ;;  %s284_s7 = scalar_lea.sflag [#allocation4], %s283_s16 }
  0x7d   : > { %p419_p1 = pnand %p876_p12, %p875_p10 }
  0x7f   : > { %593 = dma.done.wait (!%p419_p1), %s284_s7, 256  }
  0x80   : > { %595 = vsyncadd (!%p419_p1), %s284_s7, 4294967040  ;;  %s21_s14 = sadd.s32 1, %s618_s14   ;;  %s877_s9 = smov %s602_s10 }
  0x81   : > { %p18_p2 = scmp.ge.s32.totalorder %s21_s14, 4   ;;  %s878_s10 = smov %s606_s11 }
  0x82   : > { %s879_s11 = smov %s694_s23  ;;  %s880_s12 = smov %s614_s13 }
  0x83   : > { %s881_s13 = smov %s883_s17  ;;  %20 = sbr.rel (!%p18_p2) target bundleno = 8 (0x8), region = 86 }
  0x8a   :  { %289 = vsyncpa [#allocation3], 1 }
  0x8b   :  { %291 = vsyncpa [#allocation3 + $0x1], 1 }
  0x8c   :  { %292 = vsyncpa [#allocation6], 1 }
  0x8d   :  { %294 = vsyncpa [#allocation6 + $0x1], 1 }
  0x8e   :  { %295 = vsyncpa [#allocation4], 1 }
  0x8f   :  { %297 = vsyncpa [#allocation4 + $0x1], 1 }

</bundles_post_ra>
